<compile_context>
chip_gen: v7x
topology: tpu7x:2x2x1
jax: 0.10.0
libtpu: 0.0.40
codegen_flags: <defaults>
</compile_context>

<pallas_src>
import functools

import jax
import jax.numpy as jnp
from jax.experimental import pallas as pl
from jax.experimental.pallas import tpu as pltpu


# ----------------------------------------------------------------------------- helpers
def _round_up(n, m):
    return ((n + m - 1) // m) * m


def _pad2d(a, rows, cols):
    r, c = a.shape
    if r == rows and c == cols:
        return a
    return jnp.pad(a, ((0, rows - r), (0, cols - c)))


_CONSERVATIVE_SCOPED_VMEM = 16 * 1024 * 1024  # v5e default scoped limit


def _maybe_vmem_limit(bytes_needed):
    """Explicit scoped-VMEM limit only when the working set is large, capped by
    the device's real VMEM (v7x: 64 MiB/TC) minus headroom for internal scratch."""
    if bytes_needed <= _CONSERVATIVE_SCOPED_VMEM:
        return None
    try:
        cap = int(pltpu.get_tpu_info().vmem_capacity_bytes) - (8 << 20)
    except Exception:  # pragma: no cover - conservative fallback, valid on all gens
        cap = 56 * 1024 * 1024
    return int(min(int(bytes_needed) + (4 << 20), cap))


def _batch_tiling(B, tile_b):
    """Pick (tile, padded_batch).

    Tiles are 128-row aligned (lane/MXU friendly and >= bf16's 16-row packed
    sublane minimum).  Batches >= ~256 rows get at least 2 grid steps so the
    "parallel" grid axis can shard across both TensorCores on v7x.
    """
    tile_b = max(128, _round_up(tile_b, 128))
    if B < 256:
        tile = 128
    elif B <= 2 * tile_b:
        tile = max(128, _round_up(pl.cdiv(B, 2), 128))  # ~2 grid steps
    else:
        tile = tile_b
    return tile, _round_up(B, tile)


# ----------------------------------------------------------------------------- kernels
def _mlp5_kernel(x_ref,
                 w1_ref, b1_ref,
                 w2_ref, b2_ref,
                 w3_ref, b3_ref,
                 w4_ref, b4_ref,
                 w5_ref, b5_ref,
                 o_ref,
                 *, use_activation, output_sigmoid, compute_dtype):
    """Fused 5-layer MLP on one batch tile; all weights stay VMEM-resident."""
    h = x_ref[...]  # (tile, D_in_pad), compute_dtype
    for w_ref, b_ref in ((w1_ref, b1_ref), (w2_ref, b2_ref),
                         (w3_ref, b3_ref), (w4_ref, b4_ref)):
        h = jnp.dot(h, w_ref[...], preferred_element_type=jnp.float32) + b_ref[...]
        if use_activation:
            h = jnp.maximum(h, 0.0)
        # TODO(synk): nn.Dropout(p) is identity in eval mode; omitted (inference kernel).
        h = h.astype(compute_dtype)

    # Final H -> 1 layer in canonical (tile, H) x (H, 1) form: no operand
    # transposes anywhere in the kernel (the output is only `tile` scalars).
    out = jnp.dot(h, w5_ref[...], preferred_element_type=jnp.float32) + b5_ref[...]
    if output_sigmoid:
        out = 1.0 / (1.0 + jnp.exp(-out))
        out = out * 9.0 + 1.0          # upper=10, lower=1 -> scale=9
    o_ref[...] = out.astype(o_ref.dtype)   # (tile, 1)


def _collapsed_kernel(x_ref, w_ref, b_ref, o_ref, *, output_sigmoid):
    """Activation-free chain folded offline: out = x @ W_eff + b_eff.

    W_eff/b_eff stay f32 for accuracy; x may stream as bf16 (halved HBM traffic
    on this memory-bound path) and is upcast in-register before the matvec.
    """
    x = x_ref[...].astype(jnp.float32)
    out = jnp.dot(x, w_ref[...], preferred_element_type=jnp.float32) + b_ref[...]
    if output_sigmoid:
        out = 1.0 / (1.0 + jnp.exp(-out))
        out = out * 9.0 + 1.0
    o_ref[...] = out.astype(o_ref.dtype)   # (tile, 1)


# ----------------------------------------------------------------------------- wrapper
@functools.partial(jax.jit,
                   static_argnames=("tile_b", "collapsed_tile_b", "use_activation",
                                    "output_activation", "collapse", "compute_dtype"))
def aesthetic_scorer_forward(x, params, *, tile_b=256, collapsed_tile_b=1024,
                             use_activation=False, output_activation=None,
                             collapse=None, compute_dtype=jnp.bfloat16):
    """Pallas forward pass of AestheticScorer.

    x:      [B, D_in]
    params: dict with w1..w5 stored [in, out] (transposed from nn.Linear) and
            b1..b5 stored [1, out].
    returns [B, 1] float32.
    """
    B, D_in = x.shape
    output_sigmoid = (output_activation == "sigmoid")
    if collapse is None:
        collapse = not use_activation
    if collapse and use_activation:
        raise ValueError("collapse=True is only valid when use_activation=False")

    d_ins = [params[f"w{i}"].shape[0] for i in range(1, 6)]
    d_outs = [params[f"w{i}"].shape[1] for i in range(1, 6)]
    assert d_ins[0] == D_in and d_outs[4] == 1

    d_in_pad = _round_up(D_in, 128)
    itemsize = jnp.dtype(compute_dtype).itemsize

    # ---- batch tiling ------------------------------------------------------
    if collapse:
        # Memory-bound HBM streaming: use big tiles (default 1024 rows) to
        # amortize per-grid-step overhead, clamped so the double-buffered x
        # tile stays under ~24 MiB (fits every generation's VMEM).
        max_rows = max(128, ((24 << 20) // (2 * d_in_pad * itemsize)) // 128 * 128)
        eff_tile_b = min(collapsed_tile_b, max_rows)
    else:
        eff_tile_b = tile_b
    tile, b_pad = _batch_tiling(B, eff_tile_b)
    grid = (b_pad // tile,)

    x_p = _pad2d(x.astype(compute_dtype), b_pad, d_in_pad)

    x_spec = pl.BlockSpec((tile, d_in_pad), lambda i: (i, 0))
    out_spec = pl.BlockSpec((tile, 1), lambda i: (i, 0))
    out_shape = jax.ShapeDtypeStruct((b_pad, 1), jnp.float32)

    def const_spec(shape):
        # Constant-index blocks stay VMEM-resident across the whole grid and are
        # single-buffered: there is nothing to pipeline for a block that never
        # changes, so Buffered(1) halves their VMEM footprint.
        return pl.BlockSpec(shape, lambda i: (0, 0), pipeline_mode=pl.Buffered(1))

    if collapse:
        # Fold the purely-linear chain right-to-left (cheap matvec chain), in f32:
        #   W_eff = W1 W2 W3 W4 W5,  b_eff = b1 W2..W5 + b2 W3..W5 + ... + b5
        w_eff = params["w5"].astype(jnp.float32)       # (H4, 1)
        b_eff = params["b5"].astype(jnp.float32)       # (1, 1)
        for i in (4, 3, 2, 1):
            w_i = params[f"w{i}"].astype(jnp.float32)
            b_i = params[f"b{i}"].astype(jnp.float32)
            b_eff = b_i @ w_eff + b_eff
            w_eff = w_i @ w_eff
        w_eff = _pad2d(w_eff, d_in_pad, 1)             # stays f32 (accuracy)

        kernel = functools.partial(_collapsed_kernel, output_sigmoid=output_sigmoid)
        in_specs = [x_spec, const_spec((d_in_pad, 1)), const_spec((1, 1))]
        operands = (x_p, w_eff, b_eff)
        resident = (2 * tile * d_in_pad * itemsize     # x tile, double-buffered
                    + tile * d_in_pad * 4              # in-kernel f32 upcast of x
                    + d_in_pad * 4 + 4                 # W_eff + b_eff (single-buffered)
                    + 2 * tile * 4)                    # output column tiles
    else:
        h_pads = [_round_up(d, 128) for d in d_outs[:4]]
        in_pads = [d_in_pad] + h_pads
        ws, bs = [], []
        for i in range(4):
            ws.append(_pad2d(params[f"w{i+1}"], in_pads[i], h_pads[i]).astype(compute_dtype))
            bs.append(_pad2d(params[f"b{i+1}"], 1, h_pads[i]).astype(jnp.float32))
        w5 = _pad2d(params["w5"], in_pads[4], 1).astype(compute_dtype)
        b5 = params["b5"].astype(jnp.float32)

        kernel = functools.partial(_mlp5_kernel,
                                   use_activation=use_activation,
                                   output_sigmoid=output_sigmoid,
                                   compute_dtype=compute_dtype)
        in_specs = [x_spec]
        operands = [x_p]
        for i in range(4):
            in_specs += [const_spec((in_pads[i], h_pads[i])),
                         const_spec((1, h_pads[i]))]
            operands += [ws[i], bs[i]]
        in_specs += [const_spec((in_pads[4], 1)), const_spec((1, 1))]
        operands += [w5, b5]
        operands = tuple(operands)

        # TODO(synk): for H >= ~2048 f32 on v7x (64 MiB VMEM) the resident weight
        # set should additionally be blocked along the hidden dim; bf16 weights +
        # Buffered(1) comfortably cover the module's default hidden_dim=1024.
        weight_bytes = sum(int(a.size) * a.dtype.itemsize for a in ws + bs)
        weight_bytes += int(w5.size) * w5.dtype.itemsize + 4
        act_bytes = 2 * tile * max(in_pads) * (4 + itemsize)   # f32 + cast temporaries
        resident = (2 * (tile * d_in_pad * itemsize + tile * 4)
                    + weight_bytes + act_bytes)

    out = pl.pallas_call(
        kernel,
        out_shape=out_shape,
        grid_spec=pltpu.PrefetchScalarGridSpec(
            num_scalar_prefetch=0,
            grid=grid,
            in_specs=in_specs,
            out_specs=out_spec,
        ),
        compiler_params=pltpu.CompilerParams(
            dimension_semantics=("parallel",),     # batch tiles shard across TCs on v7x
            vmem_limit_bytes=_maybe_vmem_limit(resident),
        ),
    )(*operands)

    return out[:B]     # (B, 1) float32


# ----------------------------------------------------------------------------- reference
def init_params(key, input_size, hidden_dim, reduce_dims=False):
    """Deterministic init mimicking nn.Linear's U(-1/sqrt(fan_in), +1/sqrt(fan_in))."""
    h = hidden_dim
    outs = [h,
            round(h / (2 if reduce_dims else 1)),
            round(h / (4 if reduce_dims else 1)),
            round(h / (8 if reduce_dims else 1)),
            1]
    ins = [input_size] + outs[:-1]
    params = {}
    for idx, (fan_in, fan_out) in enumerate(zip(ins, outs), start=1):
        key, kw, kb = jax.random.split(key, 3)
        bound = 1.0 / jnp.sqrt(jnp.float32(fan_in))
        params[f"w{idx}"] = jax.random.uniform(kw, (fan_in, fan_out), jnp.float32, -bound, bound)
        params[f"b{idx}"] = jax.random.uniform(kb, (1, fan_out), jnp.float32, -bound, bound)
    return params


def reference_forward(x, params, *, use_activation=False, output_activation=None):
    """Pure-JAX reference (same semantics as the PyTorch module in eval mode)."""
    h = x
    for i in range(1, 5):
        h = h @ params[f"w{i}"] + params[f"b{i}"]
        if use_activation:
            h = jnp.maximum(h, 0.0)
    h = h @ params["w5"] + params["b5"]
    if output_activation == "sigmoid":
        h = jax.nn.sigmoid(h) * 9.0 + 1.0
    return h


# ----------------------------------------------------------------------------- demo
if __name__ == "__main__":
    key = jax.random.PRNGKey(0)
    kx, kp = jax.random.split(key)

    input_size = 32
    hidden_dim = 32
    params = init_params(kp, input_size, hidden_dim)

    x1 = jax.random.normal(kx, (200, input_size), dtype=jnp.float32)
    ref1 = reference_forward(x1, params)

    # Case 1: f32, collapsed single-matvec path (default config); B=200 -> two
    #         128-row tiles (padding path exercised).
    out1 = jax.block_until_ready(
        aesthetic_scorer_forward(x1, params, compute_dtype=jnp.float32))
    assert out1.shape == (200, 1)
    assert jnp.allclose(out1, ref1, atol=1e-4, rtol=1e-4), "collapsed f32 path mismatch"

    # Case 2: f32, fused 5-layer kernel (weights VMEM-resident, Buffered(1)).
    out2 = jax.block_until_ready(
        aesthetic_scorer_forward(x1, params, collapse=False, compute_dtype=jnp.float32))
    assert jnp.allclose(out2, ref1, atol=1e-4, rtol=1e-4), "fused f32 path mismatch"

    # Case 3: f32, ReLU + sigmoid output (scores in [1, 10]); odd batch (42) hits
    #         the single-tile zero-padding path.
    x3 = jax.random.normal(jax.random.PRNGKey(3), (42, input_size), dtype=jnp.float32)
    ref3 = reference_forward(x3, params, use_activation=True, output_activation="sigmoid")
    out3 = jax.block_until_ready(aesthetic_scorer_forward(
        x3, params, use_activation=True, output_activation="sigmoid",
        compute_dtype=jnp.float32))
    assert out3.shape == (42, 1)
    assert jnp.allclose(out3, ref3, atol=1e-4, rtol=1e-4), "relu/sigmoid path mismatch"

    # Case 4: default bf16 streaming (collapsed) path; W_eff fold stays f32.
    out4 = jax.block_until_ready(aesthetic_scorer_forward(x1, params))
    assert out4.shape == (200, 1)
    assert jnp.allclose(out4, ref1, atol=1e-1, rtol=1e-1), "collapsed bf16 path mismatch"

    # Case 5: default bf16 fused path (native MXU dtype, f32 accumulation).
    out5 = jax.block_until_ready(aesthetic_scorer_forward(x1, params, collapse=False))
    assert jnp.allclose(out5, ref1, atol=1e-1, rtol=1e-1), "fused bf16 path mismatch"

    print("KERNEL_OK")
</pallas_src>

<mosaic_0001>
module attributes {stable_mosaic.version = 11 : i64} {
  func.func @_collapsed_kernel(%arg0: i32, %arg1: memref<128x128xf32, #tpu.memory_space<vmem>>, %arg2: memref<128x1xf32, #tpu.memory_space<vmem>>, %arg3: memref<1x1xf32, #tpu.memory_space<vmem>>, %arg4: memref<128x1xf32, #tpu.memory_space<vmem>>) attributes {dimension_semantics = [#tpu.dimension_semantics<parallel>], iteration_bounds = array<i64: 2>, scalar_prefetch = 0 : i64, scratch_operands = 0 : i64, tpu.core_type = #tpu.core_type<tc>, window_params = [{transform_indices = @transform_0, window_bounds = array<i64: 128, 128>}, {pipeline_mode = #tpu.pipeline_mode<synchronous>, transform_indices = @transform_1, window_bounds = array<i64: 128, 1>}, {pipeline_mode = #tpu.pipeline_mode<synchronous>, transform_indices = @transform_2, window_bounds = array<i64: 1, 1>}, {transform_indices = @transform_3, window_bounds = array<i64: 128, 1>}]} {
    %c0 = arith.constant 0 : index
    %c0_0 = arith.constant 0 : index
    %0 = vector.load %arg1[%c0, %c0_0] : memref<128x128xf32, #tpu.memory_space<vmem>>, vector<128x128xf32>
    %c0_1 = arith.constant 0 : index
    %c0_2 = arith.constant 0 : index
    %1 = vector.load %arg2[%c0_1, %c0_2] : memref<128x1xf32, #tpu.memory_space<vmem>>, vector<128x1xf32>
    %cst = arith.constant dense<0.000000e+00> : vector<128x1xf32>
    %2 = tpu.matmul %0, %1, %cst {dimension_numbers = #tpu.dot_dimension_numbers<[1], [0], [0], [1], [0, 0, 1, 1], [], []>} : vector<128x128xf32>, vector<128x1xf32>, vector<128x1xf32> -> vector<128x1xf32>
    %c0_3 = arith.constant 0 : index
    %c0_4 = arith.constant 0 : index
    %3 = vector.load %arg3[%c0_3, %c0_4] : memref<1x1xf32, #tpu.memory_space<vmem>>, vector<1x1xf32>
    %4 = vector.broadcast %3 : vector<1x1xf32> to vector<128x1xf32>
    %5 = arith.addf %2, %4 : vector<128x1xf32>
    %c0_5 = arith.constant 0 : index
    %c0_6 = arith.constant 0 : index
    %6 = vector.load %arg4[%c0_5, %c0_6] : memref<128x1xf32, #tpu.memory_space<vmem>>, vector<128x1xf32>
    tpu.vector_store %arg4[%c0_5, %c0_6], %5 {strides = array<i32>} : memref<128x1xf32, #tpu.memory_space<vmem>>, vector<128x1xf32>,
    return
  }
  func.func @transform_0(%arg0: i32) -> (i32, i32) {
    %c0_i32 = arith.constant 0 : i32
    %c0_i32_0 = arith.constant 0 : i32
    return %arg0, %c0_i32 : i32, i32
  }
  func.func @transform_1(%arg0: i32) -> (i32, i32) {
    %c0_i32 = arith.constant 0 : i32
    %c0_i32_0 = arith.constant 0 : i32
    %c0_i32_1 = arith.constant 0 : i32
    return %c0_i32, %c0_i32_0 : i32, i32
  }
  func.func @transform_2(%arg0: i32) -> (i32, i32) {
    %c0_i32 = arith.constant 0 : i32
    %c0_i32_0 = arith.constant 0 : i32
    %c0_i32_1 = arith.constant 0 : i32
    return %c0_i32, %c0_i32_0 : i32, i32
  }
  func.func @transform_3(%arg0: i32) -> (i32, i32) {
    %c0_i32 = arith.constant 0 : i32
    %c0_i32_0 = arith.constant 0 : i32
    return %arg0, %c0_i32 : i32, i32
  }
}

</mosaic_0001>

<bundles_post_ra>
// kernel: aesthetic_scorer_forward.1
= control target key start
LH: loop header
LB: loop body
LE: loop exit
PB: predicated region body
PF: predicated region fallthrough
CT: control target
= control target key end

     0   :  { %s620_s14 = smov 0   ;;  %s744_s0 = inlined_call_operand.vmem [shape: f32[256,128], index: 0, kind: input, shape index: {}]   ;;  %s745_s1 = inlined_call_operand.vmem [shape: f32[128,1], index: 1, kind: input, shape index: {}]   ;;  %s746_s2 = inlined_call_operand.<no memory space> [shape: f32[1,1], index: 2, kind: input, shape index: {}]   ;;  %s747_s3 = inlined_call_operand.vmem [shape: f32[256,1], index: 3, kind: output, shape index: {}]  }
   0x1   :  { %v8_v0 = vstv %s746_s2 }
   0x2   :  { %9 = vst [vmem:[#allocation2] sm:$0x1] %v8_v0 }
   0x3 LB: > { %s433_s15 = sadd.s32 4294967295, %s595_s14   ;;  %p437_p0 = scmp.ge.s32.totalorder %s595_s14, 1  ;;  %s595_s14 = sphi %s620_s14, %s15_s14  }
   0x4   : > { %p140_p1 = scmp.lt.s32.totalorder %s595_s14, 3 }
   0x6   : > { %p141_p2 = pnand %p437_p0, %p140_p1 }
   0x7   : > { %v192_v1 = vld [vmem:[%s745_s1] sm:$0xff] (!%p141_p2)  ;;  %v193_v2 = vld [vmem:[%s745_s1 + $0x8] sm:$0xff] (!%p141_p2)  ;;  %v194_v3 = vld [vmem:[%s745_s1 + $0x10] sm:$0xff] (!%p141_p2)  ;;  %s438_s21 = sshll.u32 (!%p141_p2), %s433_s15, 4  ;;  %vm360_vm0 = vcmask (!%p141_p2), 7168  }
   0x8   : > { %144 = sbr.rel (%p141_p2) target bundleno = 271 (0x10f), region = 32  ;;  %v533_v4 = vpack.c.bf16 (!%p141_p2), %v193_v2, %v192_v1  ;;  %v195_v5 = vld [vmem:[%s745_s1 + $0x18] sm:$0xff] (!%p141_p2)  ;;  %p165_p3 = scmp.lt.s32.totalorder (!%p141_p2), %s438_s21, 31  ;;  %v196_v7 = vld [vmem:[%s745_s1 + $0x20] sm:$0xff] (!%p141_p2)  ;;  %v197_v8 = vld [vmem:[%s745_s1 + $0x28] sm:$0xff] (!%p141_p2) }
   0x9   : > { %v537_v6 = vpack.c.bf16 (!%p141_p2), %v195_v5, %v194_v3  ;;  %v541_v9 = vpack.c.bf16 (!%p141_p2), %v197_v8, %v196_v7  ;;  %v198_v10 = vld [vmem:[%s745_s1 + $0x30] sm:$0xff] (!%p141_p2)  ;;  %v199_v11 = vld [vmem:[%s745_s1 + $0x38] sm:$0xff] (!%p141_p2)  ;;  %v200_v15 = vld [vmem:[%s745_s1 + $0x40] sm:$0xff] (!%p141_p2) }
   0xa   : > { %534 = vmatprep.subr.bf16.mxu0 (!%p141_p2), %v533_v4  ;;  %565 = vmatprep.subr.bf16.mxu1 (!%p141_p2), %v533_v4  ;;  %v545_v14 = vpack.c.bf16 (!%p141_p2), %v199_v11, %v198_v10  ;;  %v201_v16 = vld [vmem:[%s745_s1 + $0x48] sm:$0xff] (!%p141_p2)  ;;  %v202_v18 = vld [vmem:[%s745_s1 + $0x50] sm:$0xff] (!%p141_p2)  ;;  %v203_v19 = vld [vmem:[%s745_s1 + $0x58] sm:$0xff] (!%p141_p2) }
   0xb   : > { %536 = vmatpush3.bf16.msra.mxu0 (!%p141_p2), %v533_v4  ;;  %573 = vmatpush3.bf16.msra.mxu1 (!%p141_p2), %v533_v4  ;;  %v549_v17 = vpack.c.bf16 (!%p141_p2), %v201_v16, %v200_v15  ;;  %v553_v20 = vpack.c.bf16 (!%p141_p2), %v203_v19, %v202_v18  ;;  %v204_v21 = vld [vmem:[%s745_s1 + $0x60] sm:$0xff] (!%p141_p2)  ;;  %v205_v22 = vld [vmem:[%s745_s1 + $0x68] sm:$0xff] (!%p141_p2)  ;;  %v206_v24 = vld [vmem:[%s745_s1 + $0x70] sm:$0xff] (!%p141_p2) }
   0xc   : > { %538 = vmatprep.subr.bf16.mxu0 (!%p141_p2), %v537_v6  ;;  %566 = vmatprep.subr.bf16.mxu1 (!%p141_p2), %v537_v6  ;;  %v557_v23 = vpack.c.bf16 (!%p141_p2), %v205_v22, %v204_v21  ;;  %v207_v25 = vld [vmem:[%s745_s1 + $0x78] sm:$0xff] (!%p141_p2)  ;;  %v442_v41 = vld [vmem:[#allocation2] ss:$0 sm:$0xff] (!%p141_p2) }
   0xd   : > { %v561_v26 = vpack.c.bf16 (!%p141_p2), %v207_v25, %v206_v24 }
   0xf   : > { %s749_s21 = smov (!%p165_p3, %s438_s21), 31  ;;  %540 = vmatpush3.bf16.msra.mxu0 %v537_v6  ;;  %574 = vmatpush3.bf16.msra.mxu1 %v537_v6 }
  0x10   : > { %s439_s28 = sshll.u32 %s749_s21, 3  ;;  %542 = vmatprep.subr.bf16.mxu0 %v541_v9  ;;  %567 = vmatprep.subr.bf16.mxu1 %v541_v9 }
  0x11   : > { %s660_s8 = scalar_lea.vmem %s744_s0, %s439_s28  ;;  %s707_s29 = scalar_lea.vmem %s747_s3, %s439_s28 }
  0x12   : > { %v176_v12 = vld [vmem:[%s660_s8] sm:$0xff]  ;;  %v177_v27 = vld [vmem:[%s660_s8 + $0x8] sm:$0xff]  ;;  %v178_v29 = vld [vmem:[%s660_s8 + $0x10] sm:$0xff] }
  0x13   : > { %v184_v13 = vld [vmem:[%s660_s8 + $0x40] sm:$0xff]  ;;  %509 = vmatprep.mubr.f32.mxu0 %v176_v12  ;;  %544 = vmatpush3.bf16.msra.mxu0 %v541_v9  ;;  %v185_v28 = vld [vmem:[%s660_s8 + $0x48] sm:$0xff]  ;;  %v186_v30 = vld [vmem:[%s660_s8 + $0x50] sm:$0xff] }
  0x14   : > { %521 = vmatprep.mubr.f32.mxu1 %v184_v13  ;;  %575 = vmatpush3.bf16.msra.mxu1 %v541_v9  ;;  %v179_v31 = vld [vmem:[%s660_s8 + $0x18] sm:$0xff]  ;;  %v180_v33 = vld [vmem:[%s660_s8 + $0x20] sm:$0xff]  ;;  %v181_v35 = vld [vmem:[%s660_s8 + $0x28] sm:$0xff] }
  0x15   : > { %546 = vmatprep.subr.bf16.mxu0 %v545_v14  ;;  %568 = vmatprep.subr.bf16.mxu1 %v545_v14  ;;  %v187_v32 = vld [vmem:[%s660_s8 + $0x58] sm:$0xff]  ;;  %v188_v34 = vld [vmem:[%s660_s8 + $0x60] sm:$0xff]  ;;  %v189_v36 = vld [vmem:[%s660_s8 + $0x68] sm:$0xff] }
  0x16   : > { %v182_v37 = vld [vmem:[%s660_s8 + $0x30] sm:$0xff]  ;;  %v183_v39 = vld [vmem:[%s660_s8 + $0x38] sm:$0xff] }
  0x17   : > { %548 = vmatpush3.bf16.msra.mxu0 %v545_v14  ;;  %v190_v38 = vld [vmem:[%s660_s8 + $0x70] sm:$0xff]  ;;  %v191_v40 = vld [vmem:[%s660_s8 + $0x78] sm:$0xff] }
  0x18   : > { %576 = vmatpush3.bf16.msra.mxu1 %v545_v14  ;;  %550 = vmatprep.subr.bf16.mxu0 %v549_v17 }
  0x19   : > { %569 = vmatprep.subr.bf16.mxu1 %v549_v17 }
  0x1b   : > { %552 = vmatpush3.bf16.msra.mxu0 %v549_v17 }
  0x1c   : > { %577 = vmatpush3.bf16.msra.mxu1 %v549_v17  ;;  %554 = vmatprep.subr.bf16.mxu0 %v553_v20 }
  0x1d   : > { %570 = vmatprep.subr.bf16.mxu1 %v553_v20 }
  0x1f   : > { %556 = vmatpush3.bf16.msra.mxu0 %v553_v20 }
  0x20   : > { %578 = vmatpush3.bf16.msra.mxu1 %v553_v20  ;;  %558 = vmatprep.subr.bf16.mxu0 %v557_v23 }
  0x21   : > { %571 = vmatprep.subr.bf16.mxu1 %v557_v23 }
  0x23   : > { %560 = vmatpush3.bf16.msra.mxu0 %v557_v23 }
  0x24   : > { %579 = vmatpush3.bf16.msra.mxu1 %v557_v23  ;;  %562 = vmatprep.subr.bf16.mxu0 %v561_v26 }
  0x25   : > { %572 = vmatprep.subr.bf16.mxu1 %v561_v26 }
  0x27   : > { %564 = vmatpush3.bf16.msra.mxu0 %v561_v26 }
  0x28   : > { %580 = vmatpush3.bf16.msra.mxu1 %v561_v26 }
  0x2a   : > { %510 = vmatmul.mubr.f32.vlgmr.msra.gmra.mrb[0].mxu0 %v177_v27 }
  0x2b   : > { %522 = vmatmul.mubr.f32.vlgmr.msra.gmra.mrb[0].mxu1 %v185_v28  ;;  %512 = vmatprep.mubr.f32.mxu0 %v178_v29 }
  0x2c   : > { %524 = vmatprep.mubr.f32.mxu1 %v186_v30 }
  0x2e   : > { %513 = vmatmul.mubr.f32.gmra.mrb[2].mxu0 %v179_v31 }
  0x2f   : > { %525 = vmatmul.mubr.f32.gmra.mrb[2].mxu1 %v187_v32  ;;  %515 = vmatprep.mubr.f32.mxu0 %v180_v33 }
  0x30   : > { %527 = vmatprep.mubr.f32.mxu1 %v188_v34 }
  0x32   : > { %516 = vmatmul.mubr.f32.gmra.mrb[4].mxu0 %v181_v35 }
  0x33   : > { %528 = vmatmul.mubr.f32.gmra.mrb[4].mxu1 %v189_v36  ;;  %518 = vmatprep.mubr.f32.mxu0 %v182_v37 }
  0x34   : > { %530 = vmatprep.mubr.f32.mxu1 %v190_v38 }
  0x36   : > { %519 = vmatmul.mubr.f32.gmra.mrb[6].mxu0 %v183_v39 }
  0x37   : > { %531 = vmatmul.mubr.f32.gmra.mrb[6].mxu1 %v191_v40 }
  0xfd   : > { %v511_v42 = vpop.f32.mrb[0].mxu0 }
  0xfe   : > { %v523_v43 = vpop.f32.mrb[0].mxu1  ;;  %v287_v44 = vadd.f32 %v511_v42, %v442_v41  ;;  %v281_v46 = vpop.f32.mrb[1].mxu0 }
  0xff   : > { %v327_v45 = vadd.f32 %v523_v43, %v442_v41  ;;  %v321_v47 = vpop.f32.mrb[1].mxu1  ;;  %v282_v48 = vadd.f32 %v442_v41, %v281_v46 }
 0x100   : > { %v322_v49 = vadd.f32 %v442_v41, %v321_v47  ;;  %362 = vst.msk [vmem:[%s707_s29 + $0x8] sm:$0xff] %vm360_vm0, %v287_v44 }
 0x101   : > { %370 = vst.msk [vmem:[%s707_s29 + $0x48] sm:$0xff] %vm360_vm0, %v327_v45  ;;  %361 = vst.msk [vmem:[%s707_s29] sm:$0xff] %vm360_vm0, %v282_v48  ;;  %v514_v50 = vpop.f32.mrb[2].mxu0 }
 0x102   : > { %369 = vst.msk [vmem:[%s707_s29 + $0x40] sm:$0xff] %vm360_vm0, %v322_v49  ;;  %v526_v51 = vpop.f32.mrb[2].mxu1  ;;  %v297_v52 = vadd.f32 %v514_v50, %v442_v41  ;;  %v291_v54 = vpop.f32.mrb[3].mxu0 }
 0x103   : > { %v337_v53 = vadd.f32 %v526_v51, %v442_v41  ;;  %v331_v55 = vpop.f32.mrb[3].mxu1  ;;  %v292_v56 = vadd.f32 %v442_v41, %v291_v54 }
 0x104   : > { %v332_v57 = vadd.f32 %v442_v41, %v331_v55  ;;  %364 = vst.msk [vmem:[%s707_s29 + $0x18] sm:$0xff] %vm360_vm0, %v297_v52 }
 0x105   : > { %372 = vst.msk [vmem:[%s707_s29 + $0x58] sm:$0xff] %vm360_vm0, %v337_v53  ;;  %363 = vst.msk [vmem:[%s707_s29 + $0x10] sm:$0xff] %vm360_vm0, %v292_v56  ;;  %v517_v58 = vpop.f32.mrb[4].mxu0 }
 0x106   : > { %371 = vst.msk [vmem:[%s707_s29 + $0x50] sm:$0xff] %vm360_vm0, %v332_v57  ;;  %v529_v59 = vpop.f32.mrb[4].mxu1  ;;  %v307_v60 = vadd.f32 %v517_v58, %v442_v41  ;;  %v301_v62 = vpop.f32.mrb[5].mxu0 }
 0x107   : > { %v347_v61 = vadd.f32 %v529_v59, %v442_v41  ;;  %v341_v63 = vpop.f32.mrb[5].mxu1  ;;  %v302_v0 = vadd.f32 %v442_v41, %v301_v62 }
 0x108   : > { %v342_v1 = vadd.f32 %v442_v41, %v341_v63  ;;  %366 = vst.msk [vmem:[%s707_s29 + $0x28] sm:$0xff] %vm360_vm0, %v307_v60 }
 0x109   : > { %374 = vst.msk [vmem:[%s707_s29 + $0x68] sm:$0xff] %vm360_vm0, %v347_v61  ;;  %365 = vst.msk [vmem:[%s707_s29 + $0x20] sm:$0xff] %vm360_vm0, %v302_v0  ;;  %v520_v2 = vpop.f32.mrb[6].mxu0 }
 0x10a   : > { %373 = vst.msk [vmem:[%s707_s29 + $0x60] sm:$0xff] %vm360_vm0, %v342_v1  ;;  %v532_v3 = vpop.f32.mrb[6].mxu1  ;;  %v317_v4 = vadd.f32 %v520_v2, %v442_v41  ;;  %v311_v6 = vpop.f32.mrb[7].mxu0 }
 0x10b   : > { %v357_v5 = vadd.f32 %v532_v3, %v442_v41  ;;  %v351_v7 = vpop.f32.mrb[7].mxu1  ;;  %v312_v8 = vadd.f32 %v442_v41, %v311_v6 }
 0x10c   : > { %v352_v9 = vadd.f32 %v442_v41, %v351_v7  ;;  %368 = vst.msk [vmem:[%s707_s29 + $0x38] sm:$0xff] %vm360_vm0, %v317_v4 }
 0x10d   : > { %376 = vst.msk [vmem:[%s707_s29 + $0x78] sm:$0xff] %vm360_vm0, %v357_v5  ;;  %367 = vst.msk [vmem:[%s707_s29 + $0x30] sm:$0xff] %vm360_vm0, %v312_v8 }
 0x10e   : > { %375 = vst.msk [vmem:[%s707_s29 + $0x70] sm:$0xff] %vm360_vm0, %v352_v9 }
 0x10f PF: > { %s15_s14 = sadd.s32 1, %s595_s14  }
 0x110   : > { %p12_p4 = scmp.ge.s32.totalorder %s15_s14, 4  }
 0x112   :  { %14 = sbr.rel (!%p12_p4) target bundleno = 3 (0x3), region = 62 }

</bundles_post_ra>
